<compile_context>
chip_gen: v5e
topology: v5e:2x2
jax: 0.10.0
libtpu: 0.0.40
codegen_flags: <defaults>
</compile_context>

<pallas_src>
import jax
import jax.numpy as jnp
from jax.experimental import pallas as pl
from jax.experimental.pallas import tpu as pltpu

# Module hyper-parameters (from the PyTorch source)
N_BASIS_INPUT = 50
N_BASIS_OUTPUT = 50
N_HIDDEN = 50
N_REP = 5

# Packed-output layout: [rep(5) | feature(50) | coef(50) | pad(23)] -> 128 lanes
PACK_REP_OFF = 0
PACK_FEAT_OFF = PACK_REP_OFF + N_REP
PACK_COEF_OFF = PACK_FEAT_OFF + N_BASIS_INPUT
PACK_USED = PACK_COEF_OFF + N_BASIS_OUTPUT          # 105
PACK_WIDTH = 128

LANE = 128
SUBLANE = 8


def _round_up(n, m):
    return ((n + m - 1) // m) * m


def _softplus(x):
    # Matches torch.nn.Softplus(beta=1, threshold=20): linear for x > 20.
    # The exp branch can only overflow for x far above 20, which the select
    # masks, so no extra clamp is needed for the forward pass.
    return jnp.where(x > 20.0, x, jnp.log1p(jnp.exp(x)))


def fae_irr_kernel(
    x_ref,        # (block_B, M_in_pad)      raw (irregular) observations
    w_ref,        # (block_B, M_in_pad)      quadrature / observation weights
    nan_ref,      # (block_B, M_out_pad)     observed-indicator mask
    bin_t_ref,    # (M_in_pad, 50)           basis_fc_input.T (zero-padded rows)
    bout_ref,     # (50, M_out_pad)          basis_fc_output (zero-padded cols)
    w1_ref,       # (50, 50)                 fc1.weight.T
    w2_ref,       # (50, 5)                  fc2.weight.T
    w3_ref,       # (5, 50)                  fc3.weight.T
    w4_ref,       # (50, 50)                 fc4.weight.T
    xhat_ref,     # (block_B, M_out_pad)
    packed_ref,   # (block_B, 128)           [rep | feature | coef | zero pad]
):
    # Project: feature = (x * W) @ basis_fc_input.T
    xw = x_ref[...] * w_ref[...]
    feature = jnp.dot(xw, bin_t_ref[...], preferred_element_type=jnp.float32)

    # Encoder
    t1 = _softplus(jnp.dot(feature, w1_ref[...], preferred_element_type=jnp.float32))
    rep = jnp.dot(t1, w2_ref[...], preferred_element_type=jnp.float32)

    # Decoder
    t2 = _softplus(jnp.dot(rep, w3_ref[...], preferred_element_type=jnp.float32))
    coef = jnp.dot(t2, w4_ref[...], preferred_element_type=jnp.float32)

    # Revert: x_hat = (coef @ basis_fc_output) * nan_ind  (lane-dense, padded)
    g = jnp.dot(coef, bout_ref[...], preferred_element_type=jnp.float32)
    xhat_ref[...] = g * nan_ref[...]

    # Pack the skinny outputs into one lane-dense (block_B, 128) slab and issue
    # a single full-width store (no masked partial stores).
    pad = jnp.zeros((rep.shape[0], PACK_WIDTH - PACK_USED), dtype=jnp.float32)
    packed_ref[...] = jnp.concatenate([rep, feature, coef, pad], axis=-1)


def _pad2d(arr, rows, cols):
    r, c = arr.shape
    return jnp.pad(arr, ((0, rows - r), (0, cols - c)))


def _vmem_limit_bytes(block_B, m_in_pad, m_out_pad):
    f32 = 4
    blocked = (
        2 * block_B * m_in_pad      # x, W
        + block_B * m_out_pad       # nan_ind
        + block_B * m_out_pad       # x_hat
        + block_B * PACK_WIDTH      # packed outputs
    )
    resident = (
        m_in_pad * N_BASIS_INPUT
        + N_BASIS_OUTPUT * m_out_pad
        + N_BASIS_INPUT * N_HIDDEN
        + N_HIDDEN * N_REP
        + N_REP * N_HIDDEN
        + N_HIDDEN * N_BASIS_OUTPUT
    )
    # 2x double-buffering on blocked streams, 2x headroom for intermediates.
    est = f32 * (2 * blocked + 2 * resident) * 2
    # Keep under v7x's 64 MiB physical VMEM with headroom; floor at 4 MiB.
    return int(min(max(est, 4 << 20), 48 << 20))


def fae_irr_forward(x, W, nan_ind, basis_fc_input, basis_fc_output, params,
                    block_batch=256):
    """params = (fc1_w, fc2_w, fc3_w, fc4_w) in PyTorch (out_features, in_features) layout."""
    B, M_in = x.shape
    M_out = basis_fc_output.shape[1]

    # Lane-dense padding of the time axes; batch tile sized to get some MXU
    # M-axis utilization when the batch is large enough.
    m_in_pad = _round_up(M_in, LANE)
    m_out_pad = _round_up(M_out, LANE)
    if B >= block_batch:
        block_B = block_batch
    else:
        block_B = _round_up(B, SUBLANE)
    B_pad = _round_up(B, block_B)
    grid = (B_pad // block_B,)

    fc1_w, fc2_w, fc3_w, fc4_w = params
    x_p = _pad2d(x.astype(jnp.float32), B_pad, m_in_pad)
    w_p = _pad2d(W.astype(jnp.float32), B_pad, m_in_pad)
    nan_p = _pad2d(nan_ind.astype(jnp.float32), B_pad, m_out_pad)
    bin_t_p = _pad2d(basis_fc_input.T.astype(jnp.float32), m_in_pad, N_BASIS_INPUT)
    bout_p = _pad2d(basis_fc_output.astype(jnp.float32), N_BASIS_OUTPUT, m_out_pad)
    w1_t = fc1_w.T.astype(jnp.float32)   # (50, 50)
    w2_t = fc2_w.T.astype(jnp.float32)   # (50, 5)
    w3_t = fc3_w.T.astype(jnp.float32)   # (5, 50)
    w4_t = fc4_w.T.astype(jnp.float32)   # (50, 50)

    batch_spec_in = pl.BlockSpec((block_B, m_in_pad), lambda i: (i, 0))
    batch_spec_mask = pl.BlockSpec((block_B, m_out_pad), lambda i: (i, 0))
    const = lambda shape: pl.BlockSpec(shape, lambda i: (0, 0))

    in_specs = [
        batch_spec_in,                               # x
        batch_spec_in,                               # W
        batch_spec_mask,                             # nan_ind
        const((m_in_pad, N_BASIS_INPUT)),            # basis_fc_input.T
        const((N_BASIS_OUTPUT, m_out_pad)),          # basis_fc_output
        const((N_BASIS_INPUT, N_HIDDEN)),            # fc1.T
        const((N_HIDDEN, N_REP)),                    # fc2.T
        const((N_REP, N_HIDDEN)),                    # fc3.T
        const((N_HIDDEN, N_BASIS_OUTPUT)),           # fc4.T
    ]
    out_specs = (
        pl.BlockSpec((block_B, m_out_pad), lambda i: (i, 0)),   # x_hat (padded)
        pl.BlockSpec((block_B, PACK_WIDTH), lambda i: (i, 0)),  # packed small outs
    )
    out_shapes = (
        jax.ShapeDtypeStruct((B_pad, m_out_pad), jnp.float32),
        jax.ShapeDtypeStruct((B_pad, PACK_WIDTH), jnp.float32),
    )

    xhat_pad, packed = pl.pallas_call(
        fae_irr_kernel,
        out_shape=out_shapes,
        grid=grid,
        in_specs=in_specs,
        out_specs=out_specs,
        compiler_params=pltpu.CompilerParams(
            dimension_semantics=("parallel",),
            vmem_limit_bytes=_vmem_limit_bytes(block_B, m_in_pad, m_out_pad),
        ),
    )(x_p, w_p, nan_p, bin_t_p, bout_p, w1_t, w2_t, w3_t, w4_t)

    x_hat = xhat_pad[:B, :M_out]
    rep = packed[:B, PACK_REP_OFF:PACK_FEAT_OFF]
    feature = packed[:B, PACK_FEAT_OFF:PACK_COEF_OFF]
    coef = packed[:B, PACK_COEF_OFF:PACK_USED]
    return x_hat, rep, feature, coef


def _reference_forward(x, W, nan_ind, basis_fc_input, basis_fc_output, params):
    fc1_w, fc2_w, fc3_w, fc4_w = params
    feature = (x * W) @ basis_fc_input.T
    t1 = jax.nn.softplus(feature @ fc1_w.T)
    rep = t1 @ fc2_w.T
    t2 = jax.nn.softplus(rep @ fc3_w.T)
    coef = t2 @ fc4_w.T
    x_hat = (coef @ basis_fc_output) * nan_ind
    return x_hat, rep, feature, coef


if __name__ == "__main__":
    key = jax.random.PRNGKey(0)
    B = 8       # batch of curves (small test size)
    M_IN = 16   # number of (irregular) input time points
    M_OUT = 16  # number of output time points

    keys = jax.random.split(key, 9)
    x = jax.random.normal(keys[0], (B, M_IN), dtype=jnp.float32)
    W = jax.random.uniform(keys[1], (B, M_IN), dtype=jnp.float32)
    nan_ind = (jax.random.uniform(keys[2], (B, M_OUT)) > 0.2).astype(jnp.float32)
    basis_fc_input = jax.random.normal(keys[3], (N_BASIS_INPUT, M_IN), dtype=jnp.float32)
    basis_fc_output = jax.random.normal(keys[4], (N_BASIS_OUTPUT, M_OUT), dtype=jnp.float32)

    # Deterministic weight init (weight_std=0.1 path of the module)
    weight_std = 0.1
    fc1_w = weight_std * jax.random.normal(keys[5], (N_HIDDEN, N_BASIS_INPUT), dtype=jnp.float32)
    fc2_w = weight_std * jax.random.normal(keys[6], (N_REP, N_HIDDEN), dtype=jnp.float32)
    fc3_w = weight_std * jax.random.normal(keys[7], (N_HIDDEN, N_REP), dtype=jnp.float32)
    fc4_w = weight_std * jax.random.normal(keys[8], (N_BASIS_OUTPUT, N_HIDDEN), dtype=jnp.float32)
    params = (fc1_w, fc2_w, fc3_w, fc4_w)

    outs = fae_irr_forward(x, W, nan_ind, basis_fc_input, basis_fc_output, params)
    outs = jax.block_until_ready(outs)

    refs = _reference_forward(x, W, nan_ind, basis_fc_input, basis_fc_output, params)
    names = ("x_hat", "rep", "feature", "coef")
    for name, o, r in zip(names, outs, refs):
        assert o.shape == r.shape, (name, o.shape, r.shape)
        assert jnp.allclose(o, r, atol=1e-4, rtol=1e-4), name

    print("KERNEL_OK")
</pallas_src>

<mosaic_0001>
module attributes {stable_mosaic.version = 11 : i64} {
  func.func @fae_irr_kernel(%arg0: i32, %arg1: memref<8x128xf32, #tpu.memory_space<vmem>>, %arg2: memref<8x128xf32, #tpu.memory_space<vmem>>, %arg3: memref<8x128xf32, #tpu.memory_space<vmem>>, %arg4: memref<128x50xf32, #tpu.memory_space<vmem>>, %arg5: memref<50x128xf32, #tpu.memory_space<vmem>>, %arg6: memref<50x50xf32, #tpu.memory_space<vmem>>, %arg7: memref<50x5xf32, #tpu.memory_space<vmem>>, %arg8: memref<5x50xf32, #tpu.memory_space<vmem>>, %arg9: memref<50x50xf32, #tpu.memory_space<vmem>>, %arg10: memref<8x128xf32, #tpu.memory_space<vmem>>, %arg11: memref<8x128xf32, #tpu.memory_space<vmem>>) attributes {dimension_semantics = [#tpu.dimension_semantics<parallel>], iteration_bounds = array<i64: 1>, scalar_prefetch = 0 : i64, scratch_operands = 0 : i64, tpu.core_type = #tpu.core_type<tc>, window_params = [{transform_indices = @transform_0, window_bounds = array<i64: 8, 128>}, {transform_indices = @transform_1, window_bounds = array<i64: 8, 128>}, {transform_indices = @transform_2, window_bounds = array<i64: 8, 128>}, {pipeline_mode = #tpu.pipeline_mode<synchronous>, transform_indices = @transform_3, window_bounds = array<i64: 128, 50>}, {pipeline_mode = #tpu.pipeline_mode<synchronous>, transform_indices = @transform_4, window_bounds = array<i64: 50, 128>}, {pipeline_mode = #tpu.pipeline_mode<synchronous>, transform_indices = @transform_5, window_bounds = array<i64: 50, 50>}, {pipeline_mode = #tpu.pipeline_mode<synchronous>, transform_indices = @transform_6, window_bounds = array<i64: 50, 5>}, {pipeline_mode = #tpu.pipeline_mode<synchronous>, transform_indices = @transform_7, window_bounds = array<i64: 5, 50>}, {pipeline_mode = #tpu.pipeline_mode<synchronous>, transform_indices = @transform_8, window_bounds = array<i64: 50, 50>}, {transform_indices = @transform_9, window_bounds = array<i64: 8, 128>}, {transform_indices = @transform_10, window_bounds = array<i64: 8, 128>}]} {
    %c0 = arith.constant 0 : index
    %c0_0 = arith.constant 0 : index
    %0 = vector.load %arg1[%c0, %c0_0] : memref<8x128xf32, #tpu.memory_space<vmem>>, vector<8x128xf32>
    %c0_1 = arith.constant 0 : index
    %c0_2 = arith.constant 0 : index
    %1 = vector.load %arg2[%c0_1, %c0_2] : memref<8x128xf32, #tpu.memory_space<vmem>>, vector<8x128xf32>
    %2 = arith.mulf %0, %1 : vector<8x128xf32>
    %c0_3 = arith.constant 0 : index
    %c0_4 = arith.constant 0 : index
    %3 = vector.load %arg4[%c0_3, %c0_4] : memref<128x50xf32, #tpu.memory_space<vmem>>, vector<128x50xf32>
    %cst = arith.constant dense<0.000000e+00> : vector<8x50xf32>
    %4 = tpu.matmul %2, %3, %cst {dimension_numbers = #tpu.dot_dimension_numbers<[1], [0], [0], [1], [0, 0, 1, 1], [], []>} : vector<8x128xf32>, vector<128x50xf32>, vector<8x50xf32> -> vector<8x50xf32>
    %c0_5 = arith.constant 0 : index
    %c0_6 = arith.constant 0 : index
    %5 = vector.load %arg6[%c0_5, %c0_6] : memref<50x50xf32, #tpu.memory_space<vmem>>, vector<50x50xf32>
    %cst_7 = arith.constant dense<0.000000e+00> : vector<8x50xf32>
    %6 = tpu.matmul %4, %5, %cst_7 {dimension_numbers = #tpu.dot_dimension_numbers<[1], [0], [0], [1], [0, 0, 1, 1], [], []>} : vector<8x50xf32>, vector<50x50xf32>, vector<8x50xf32> -> vector<8x50xf32>
    %cst_8 = arith.constant 2.000000e+01 : f32
    %7 = vector.broadcast %cst_8 : f32 to vector<8x50xf32>
    %8 = arith.cmpf ogt, %6, %7 : vector<8x50xf32>
    %9 = math.exp %6 : vector<8x50xf32>
    %10 = math.log1p %9 : vector<8x50xf32>
    %11 = arith.select %8, %6, %10 : vector<8x50xi1>, vector<8x50xf32>
    %c0_9 = arith.constant 0 : index
    %c0_10 = arith.constant 0 : index
    %12 = vector.load %arg7[%c0_9, %c0_10] : memref<50x5xf32, #tpu.memory_space<vmem>>, vector<50x5xf32>
    %cst_11 = arith.constant dense<0.000000e+00> : vector<8x5xf32>
    %13 = tpu.matmul %11, %12, %cst_11 {dimension_numbers = #tpu.dot_dimension_numbers<[1], [0], [0], [1], [0, 0, 1, 1], [], []>} : vector<8x50xf32>, vector<50x5xf32>, vector<8x5xf32> -> vector<8x5xf32>
    %c0_12 = arith.constant 0 : index
    %c0_13 = arith.constant 0 : index
    %14 = vector.load %arg8[%c0_12, %c0_13] : memref<5x50xf32, #tpu.memory_space<vmem>>, vector<5x50xf32>
    %cst_14 = arith.constant dense<0.000000e+00> : vector<8x50xf32>
    %15 = tpu.matmul %13, %14, %cst_14 {dimension_numbers = #tpu.dot_dimension_numbers<[1], [0], [0], [1], [0, 0, 1, 1], [], []>} : vector<8x5xf32>, vector<5x50xf32>, vector<8x50xf32> -> vector<8x50xf32>
    %cst_15 = arith.constant 2.000000e+01 : f32
    %16 = vector.broadcast %cst_15 : f32 to vector<8x50xf32>
    %17 = arith.cmpf ogt, %15, %16 : vector<8x50xf32>
    %18 = math.exp %15 : vector<8x50xf32>
    %19 = math.log1p %18 : vector<8x50xf32>
    %20 = arith.select %17, %15, %19 : vector<8x50xi1>, vector<8x50xf32>
    %c0_16 = arith.constant 0 : index
    %c0_17 = arith.constant 0 : index
    %21 = vector.load %arg9[%c0_16, %c0_17] : memref<50x50xf32, #tpu.memory_space<vmem>>, vector<50x50xf32>
    %cst_18 = arith.constant dense<0.000000e+00> : vector<8x50xf32>
    %22 = tpu.matmul %20, %21, %cst_18 {dimension_numbers = #tpu.dot_dimension_numbers<[1], [0], [0], [1], [0, 0, 1, 1], [], []>} : vector<8x50xf32>, vector<50x50xf32>, vector<8x50xf32> -> vector<8x50xf32>
    %c0_19 = arith.constant 0 : index
    %c0_20 = arith.constant 0 : index
    %23 = vector.load %arg5[%c0_19, %c0_20] : memref<50x128xf32, #tpu.memory_space<vmem>>, vector<50x128xf32>
    %cst_21 = arith.constant dense<0.000000e+00> : vector<8x128xf32>
    %24 = tpu.matmul %22, %23, %cst_21 {dimension_numbers = #tpu.dot_dimension_numbers<[1], [0], [0], [1], [0, 0, 1, 1], [], []>} : vector<8x50xf32>, vector<50x128xf32>, vector<8x128xf32> -> vector<8x128xf32>
    %c0_22 = arith.constant 0 : index
    %c0_23 = arith.constant 0 : index
    %25 = vector.load %arg3[%c0_22, %c0_23] : memref<8x128xf32, #tpu.memory_space<vmem>>, vector<8x128xf32>
    %26 = arith.mulf %24, %25 : vector<8x128xf32>
    %c0_24 = arith.constant 0 : index
    %c0_25 = arith.constant 0 : index
    %27 = vector.load %arg10[%c0_24, %c0_25] : memref<8x128xf32, #tpu.memory_space<vmem>>, vector<8x128xf32>
    tpu.vector_store %arg10[%c0_24, %c0_25], %26 {strides = array<i32>} : memref<8x128xf32, #tpu.memory_space<vmem>>, vector<8x128xf32>,
    %cst_26 = arith.constant 0.000000e+00 : f32
    %28 = vector.broadcast %cst_26 : f32 to vector<8x23xf32>
    %29 = tpu.concatenate %13, %4, %22, %28 in 1 : vector<8x5xf32>, vector<8x50xf32>, vector<8x50xf32>, vector<8x23xf32> -> vector<8x128xf32>
    %c0_27 = arith.constant 0 : index
    %c0_28 = arith.constant 0 : index
    %30 = vector.load %arg11[%c0_27, %c0_28] : memref<8x128xf32, #tpu.memory_space<vmem>>, vector<8x128xf32>
    tpu.vector_store %arg11[%c0_27, %c0_28], %29 {strides = array<i32>} : memref<8x128xf32, #tpu.memory_space<vmem>>, vector<8x128xf32>,
    return
  }
  func.func @transform_0(%arg0: i32) -> (i32, i32) {
    %c0_i32 = arith.constant 0 : i32
    %c0_i32_0 = arith.constant 0 : i32
    return %arg0, %c0_i32 : i32, i32
  }
  func.func @transform_1(%arg0: i32) -> (i32, i32) {
    %c0_i32 = arith.constant 0 : i32
    %c0_i32_0 = arith.constant 0 : i32
    return %arg0, %c0_i32 : i32, i32
  }
  func.func @transform_2(%arg0: i32) -> (i32, i32) {
    %c0_i32 = arith.constant 0 : i32
    %c0_i32_0 = arith.constant 0 : i32
    return %arg0, %c0_i32 : i32, i32
  }
  func.func @transform_3(%arg0: i32) -> (i32, i32) {
    %c0_i32 = arith.constant 0 : i32
    %c0_i32_0 = arith.constant 0 : i32
    %c0_i32_1 = arith.constant 0 : i32
    return %c0_i32, %c0_i32_0 : i32, i32
  }
  func.func @transform_4(%arg0: i32) -> (i32, i32) {
    %c0_i32 = arith.constant 0 : i32
    %c0_i32_0 = arith.constant 0 : i32
    %c0_i32_1 = arith.constant 0 : i32
    return %c0_i32, %c0_i32_0 : i32, i32
  }
  func.func @transform_5(%arg0: i32) -> (i32, i32) {
    %c0_i32 = arith.constant 0 : i32
    %c0_i32_0 = arith.constant 0 : i32
    %c0_i32_1 = arith.constant 0 : i32
    return %c0_i32, %c0_i32_0 : i32, i32
  }
  func.func @transform_6(%arg0: i32) -> (i32, i32) {
    %c0_i32 = arith.constant 0 : i32
    %c0_i32_0 = arith.constant 0 : i32
    %c0_i32_1 = arith.constant 0 : i32
    return %c0_i32, %c0_i32_0 : i32, i32
  }
  func.func @transform_7(%arg0: i32) -> (i32, i32) {
    %c0_i32 = arith.constant 0 : i32
    %c0_i32_0 = arith.constant 0 : i32
    %c0_i32_1 = arith.constant 0 : i32
    return %c0_i32, %c0_i32_0 : i32, i32
  }
  func.func @transform_8(%arg0: i32) -> (i32, i32) {
    %c0_i32 = arith.constant 0 : i32
    %c0_i32_0 = arith.constant 0 : i32
    %c0_i32_1 = arith.constant 0 : i32
    return %c0_i32, %c0_i32_0 : i32, i32
  }
  func.func @transform_9(%arg0: i32) -> (i32, i32) {
    %c0_i32 = arith.constant 0 : i32
    %c0_i32_0 = arith.constant 0 : i32
    return %arg0, %c0_i32 : i32, i32
  }
  func.func @transform_10(%arg0: i32) -> (i32, i32) {
    %c0_i32 = arith.constant 0 : i32
    %c0_i32_0 = arith.constant 0 : i32
    return %arg0, %c0_i32 : i32, i32
  }
}

</mosaic_0001>

<bundles_post_ra>
// kernel: tpu_custom_call.1
= control target key start
LH: loop header
LB: loop body
LE: loop exit
PB: predicated region body
PF: predicated region fallthrough
CT: control target
= control target key end

     0   :  { %16 = vsyncpa [#allocation3], 0  ;;  %s645_s0 = inlined_call_operand.vmem [shape: f32[8,128], index: 0, kind: input, shape index: {}]   ;;  %s646_s1 = inlined_call_operand.vmem [shape: f32[8,128], index: 1, kind: input, shape index: {}]   ;;  %s647_s2 = inlined_call_operand.vmem [shape: f32[8,128], index: 2, kind: input, shape index: {}]   ;;  %s648_s3 = inlined_call_operand.vmem [shape: f32[128,50], index: 3, kind: input, shape index: {}]   ;;  %s649_s4 = inlined_call_operand.vmem [shape: f32[50,128], index: 4, kind: input, shape index: {}]   ;;  %s650_s5 = inlined_call_operand.vmem [shape: f32[50,50], index: 5, kind: input, shape index: {}]   ;;  %s651_s6 = inlined_call_operand.vmem [shape: f32[50,5], index: 6, kind: input, shape index: {}]   ;;  %s652_s7 = inlined_call_operand.hbm [shape: f32[5,50], index: 7, kind: input, shape index: {}]   ;;  %s653_s8 = inlined_call_operand.vmem [shape: f32[50,50], index: 8, kind: input, shape index: {}]   ;;  %s654_s9 = inlined_call_operand.hbm [shape: f32[8,128], index: 9, kind: output, shape index: {0}]   ;;  %s655_s10 = inlined_call_operand.hbm [shape: f32[8,128], index: 10, kind: output, shape index: {1}]  }
   0x1   :  { %17 = vsyncpa [#allocation4], 0 }
   0x2   :  { %18 = vsyncpa [#allocation7], 0  ;;  %s38_s15 = sshll.u32 %s652_s7, 4  ;;  %s427_s16 = smov [#allocation2]   ;;  %s39_s15 = int_to_ptr.hbm [resolvable:$true] %s38_s15 }
   0x3   :  { %s40_s17 = sshll.u32 %s427_s16, 4  ;;  %s41_s17 = int_to_ptr.vmem [resolvable:$true] %s40_s17 }
   0x4   :  { %43 = dma.hbm_to_vmem [thread:$0]  %s39_s15, 128, %s41_s17, [#allocation3]  }
   0x5   :  { %421 = dma.done.wait [#allocation3], 128  }
   0x6   :  { %422 = vsyncadd [#allocation3], 4294967168  ;;  %v68_v0 = vld [vmem:[%s648_s3 + $0x78] sm:$0xff]  ;;  %v67_v1 = vld [vmem:[%s648_s3 + $0x70] sm:$0xff]  ;;  %vm100_vm0 = vcmask 1041408   ;;  %vm96_vm1 = vcmask 408576  }
   0x7   :  { %69 = vmatpush.msra.mxu0 %v68_v0  ;;  %v66_v2 = vld [vmem:[%s648_s3 + $0x68] sm:$0xff]  ;;  %v65_v3 = vld [vmem:[%s648_s3 + $0x60] sm:$0xff]  ;;  %v64_v4 = vld [vmem:[%s648_s3 + $0x58] sm:$0xff]  ;;  %vm175_vm4 = vcmask 1044480   ;;  %vm171_vm5 = vcmask 39936   ;;  %s429_s16 = smov 55  }
   0x8   :  { %v95_v5 = vld [vmem:[%s650_s5 + $0x30] sm:$0x3]  ;;  %v94_v6 = vld [vmem:[%s650_s5 + $0x28] sm:$0xff]  ;;  %v93_v8 = vld [vmem:[%s650_s5 + $0x20] sm:$0xff]  ;;  %vm288_vm8 = vcmask 449536   ;;  %s430_s17 = smov [#allocation6]  }
   0x9   :  { %70 = vmatpush.msra.mxu0 %v67_v1  ;;  %326 = vmatpush.msk.msra.mxu1 %vm100_vm0, %v95_v5  ;;  %v63_v7 = vld [vmem:[%s648_s3 + $0x50] sm:$0xff]  ;;  %v62_v9 = vld [vmem:[%s648_s3 + $0x48] sm:$0xff]  ;;  %v92_v10 = vld [vmem:[%s650_s5 + $0x18] sm:$0xff]  ;;  %s309_s18 = sshll.u32 %s430_s17, 4  ;;  %s311_s21 = sshll.u32 %s655_s10, 4  ;;  %vm290_vm9 = vcmask 859136   ;;  %s310_s18 = int_to_ptr.vmem [resolvable:$true] %s309_s18  ;;  %s312_s21 = int_to_ptr.hbm [resolvable:$true] %s311_s21 }
   0xa   :  { %v61_v11 = vld [vmem:[%s648_s3 + $0x40] sm:$0xff]  ;;  %v91_v12 = vld [vmem:[%s650_s5 + $0x10] sm:$0xff]  ;;  %v60_v13 = vld [vmem:[%s648_s3 + $0x38] sm:$0xff]  ;;  %s431_s23 = smov [#allocation5]  }
   0xb   :  { %71 = vmatpush.msra.mxu0 %v66_v2  ;;  %114 = vmatpush.msra.mxu1 %v94_v6  ;;  %v90_v14 = vld [vmem:[%s650_s5 + $0x8] sm:$0xff]  ;;  %v59_v15 = vld [vmem:[%s648_s3 + $0x30] sm:$0xff]  ;;  %v57_v17 = vld [vmem:[%s648_s3 + $0x20] sm:$0xff]  ;;  %s298_s7 = sshll.u32 %s431_s23, 4  ;;  %s299_s7 = int_to_ptr.vmem [resolvable:$true] %s298_s7 }
   0xc   :  { %v58_v16 = vld [vmem:[%s648_s3 + $0x28] sm:$0xff]  ;;  %v56_v18 = vld [vmem:[%s648_s3 + $0x18] sm:$0xff]  ;;  %v55_v19 = vld [vmem:[%s648_s3 + $0x10] sm:$0xff] }
   0xd   :  { %72 = vmatpush.msra.mxu0 %v65_v3  ;;  %115 = vmatpush.msra.mxu1 %v93_v8  ;;  %v50_v20 = vld [vmem:[%s645_s0] sm:$0xff]  ;;  %v54_v22 = vld [vmem:[%s648_s3 + $0x8] sm:$0xff]  ;;  %s428_s0 = smov 5   ;;  %v143_v27 = vld [vmem:[%s651_s6 + $0x30] sm:$0x3] }
   0xe   :  { %v51_v21 = vld [vmem:[%s646_s1] sm:$0xff]  ;;  %v142_v28 = vld [vmem:[%s651_s6 + $0x28] sm:$0xff]  ;;  %328 = vmatpush.msk.msra.mxu2 %vm100_vm0, %v143_v27  ;;  %v140_v30 = vld [vmem:[%s651_s6 + $0x18] sm:$0xff]  ;;  %s300_s1 = sshll.u32 %s654_s9, 4  ;;  %s301_s1 = int_to_ptr.hbm [resolvable:$true] %s300_s1 }
   0xf   :  { %73 = vmatpush.msra.mxu0 %v64_v4  ;;  %116 = vmatpush.msra.mxu1 %v92_v10  ;;  %v53_v23 = vld [vmem:[%s648_s3] sm:$0xff]  ;;  %v52_v24 = vmul.f32 %v51_v21, %v50_v20  ;;  %v139_v31 = vld [vmem:[%s651_s6 + $0x10] sm:$0xff]  ;;  %v138_v32 = vld [vmem:[%s651_s6 + $0x8] sm:$0xff] }
  0x10   :  { %v89_v25 = vld [vmem:[%s650_s5] sm:$0xff]  ;;  %160 = vmatpush.msra.mxu2 %v142_v28  ;;  %v218_v50 = vld [vmem:[%s653_s8 + $0x30] sm:$0x3]  ;;  %v217_v51 = vld [vmem:[%s653_s8 + $0x28] sm:$0xff] }
  0x11   :  { %74 = vmatpush.msra.mxu0 %v63_v7  ;;  %117 = vmatpush.msra.mxu1 %v91_v12  ;;  %v141_v29 = vld [vmem:[%s651_s6 + $0x20] sm:$0xff]  ;;  %v215_v53 = vld [vmem:[%s653_s8 + $0x18] sm:$0xff]  ;;  %v214_v54 = vld [vmem:[%s653_s8 + $0x10] sm:$0xff] }
  0x12   :  { %161 = vmatpush.msra.mxu2 %v141_v29  ;;  %v137_v33 = vld [vmem:[%s651_s6] sm:$0xff]  ;;  %v213_v55 = vld [vmem:[%s653_s8 + $0x8] sm:$0xff]  ;;  %v251_v57 = vld [vmem:[%s649_s4 + $0x30] sm:$0x3] }
  0x13   :  { %75 = vmatpush.msra.mxu0 %v62_v9  ;;  %118 = vmatpush.msra.mxu1 %v90_v14  ;;  %v170_v46 = vld [vmem:[#allocation2] sm:$0x1f]  ;;  %v250_v58 = vld [vmem:[%s649_s4 + $0x28] sm:$0xff]  ;;  %v248_v60 = vld [vmem:[%s649_s4 + $0x18] sm:$0xff] }
  0x14   :  { %162 = vmatpush.msra.mxu2 %v140_v30  ;;  %330 = vmatpush.msk.msra.mxu3 %vm175_vm4, %v170_v46  ;;  %v216_v52 = vld [vmem:[%s653_s8 + $0x20] sm:$0xff]  ;;  %v247_v61 = vld [vmem:[%s649_s4 + $0x10] sm:$0xff]  ;;  %v246_v62 = vld [vmem:[%s649_s4 + $0x8] sm:$0xff] }
  0x15   :  { %76 = vmatpush.msra.mxu0 %v61_v11  ;;  %119 = vmatpush.msra.mxu1 %v89_v25  ;;  %v212_v56 = vld [vmem:[%s653_s8] sm:$0xff] }
  0x16   :  { %163 = vmatpush.msra.mxu2 %v139_v31  ;;  %332 = vmatpush.msk.msrb.mxu3 %vm100_vm0, %v218_v50  ;;  %v249_v59 = vld [vmem:[%s649_s4 + $0x20] sm:$0xff] }
  0x17   :  { %77 = vmatpush.msra.mxu0 %v60_v13  ;;  %334 = vmatpush.msk.msrb.mxu1 %vm100_vm0, %v251_v57  ;;  %v245_v11 = vld [vmem:[%s649_s4] sm:$0xff] }
  0x18   :  { %164 = vmatpush.msra.mxu2 %v138_v32  ;;  %235 = vmatpush.msrb.mxu3 %v217_v51 }
  0x19   :  { %78 = vmatpush.msra.mxu0 %v59_v15  ;;  %268 = vmatpush.msrb.mxu1 %v250_v58 }
  0x1a   :  { %165 = vmatpush.msra.mxu2 %v137_v33  ;;  %236 = vmatpush.msrb.mxu3 %v216_v52 }
  0x1b   :  { %79 = vmatpush.msra.mxu0 %v58_v16  ;;  %269 = vmatpush.msrb.mxu1 %v249_v59  ;;  %v278_v16 = vld [vmem:[%s647_s2] sm:$0xff] }
  0x1c   :  { %237 = vmatpush.msrb.mxu3 %v215_v53 }
  0x1d   :  { %80 = vmatpush.msra.mxu0 %v57_v17  ;;  %270 = vmatpush.msrb.mxu1 %v248_v60 }
  0x1e   :  { %238 = vmatpush.msrb.mxu3 %v214_v54 }
  0x1f   :  { %81 = vmatpush.msra.mxu0 %v56_v18  ;;  %271 = vmatpush.msrb.mxu1 %v247_v61 }
  0x20   :  { %239 = vmatpush.msrb.mxu3 %v213_v55 }
  0x21   :  { %82 = vmatpush.msra.mxu0 %v55_v19  ;;  %272 = vmatpush.msrb.mxu1 %v246_v62 }
  0x22   :  { %240 = vmatpush.msrb.mxu3 %v212_v56 }
  0x23   :  { %83 = vmatpush.msra.mxu0 %v54_v22  ;;  %273 = vmatpush.msrb.mxu1 %v245_v11 }
  0x25   :  { %84 = vmatpush.msra.mxu0 %v53_v23 }
  0x26   :  { %85 = vmatmul.f32.vlgmr.msra.gmra.mxu0 %v52_v24 }
  0xa3   :  { %v86_v26 = vpop.f32.mrf.mxu0 }
  0xa4   :  { %281 = vrot.lane.b32.xlu0 %v86_v26, %s428_s0  ;;  %327 = vmatmul.msk.f32.vlgmr.msra.gmra.mxu1 %vm96_vm1, %v86_v26 }
 0x116   :  { %v282_v47 = vpop.permute.xlu0 %281 }
 0x121   :  { %v121_v34 = vpop.f32.mrf.mxu1 }
 0x122   :  { %v125_v35 = vmul.f32 1.442695, %v121_v34  ;;  %vm124_vm3 = vcmp.gt.f32.partialorder %v121_v34, 20.0 }
 0x124   :  { %341 = vpow2.f32 %v125_v35 }
 0x12a   :  { %v342_v36 = vpop.eup %341 }
 0x12b   :  { %v127_v37 = vadd.f32 1.0, %v342_v36  ;;  %v130_v38 = vmul.f32 -0.5, %v342_v36  ;;  %v133_v40 = vand.u32 2147483647, %v342_v36 }
 0x12d   :  { %343 = vlog2.f32 %v127_v37  ;;  %v131_v39 = vadd.f32 1.0, %v130_v38  ;;  %vm134_vm2 = vcmp.lt.f32.partialorder %v133_v40, 0.0004427343 }
 0x12f   :  { %v132_v43 = vmul.f32 %v342_v36, %v131_v39 }
 0x133   :  { %v344_v41 = vpop.eup %343 }
 0x134   :  { %v129_v42 = vmul.f32 0.6931472, %v344_v41 }
 0x136   :  { %v135_v44 = vsel %vm134_vm2, %v132_v43, %v129_v42 }
 0x137   :  { %v136_v45 = vsel %vm124_vm3, %v121_v34, %v135_v44 }
 0x138   :  { %329 = vmatmul.msk.f32.vlgmr.msra.gmra.mxu2 %vm96_vm1, %v136_v45 }
 0x1bb   :  { %v167_v48 = vpop.f32.mrf.mxu2 }
 0x1bc   :  { %v287_v49 = vsel %vm171_vm5, %v167_v48, %v282_v47  ;;  %331 = vmatmul.msk.f32.vlgmr.msra.gmra.mxu3 %vm171_vm5, %v167_v48 }
 0x23f   :  { %v196_v63 = vpop.f32.mrf.mxu3 }
 0x240   :  { %v200_v0 = vmul.f32 1.442695, %v196_v63  ;;  %vm199_vm7 = vcmp.gt.f32.partialorder %v196_v63, 20.0 }
 0x242   :  { %345 = vpow2.f32 %v200_v0 }
 0x248   :  { %v346_v1 = vpop.eup %345 }
 0x249   :  { %v202_v2 = vadd.f32 1.0, %v346_v1  ;;  %v205_v3 = vmul.f32 -0.5, %v346_v1  ;;  %v208_v5 = vand.u32 2147483647, %v346_v1 }
 0x24b   :  { %347 = vlog2.f32 %v202_v2  ;;  %v206_v4 = vadd.f32 1.0, %v205_v3  ;;  %vm209_vm6 = vcmp.lt.f32.partialorder %v208_v5, 0.0004427343 }
 0x24d   :  { %v207_v8 = vmul.f32 %v346_v1, %v206_v4 }
 0x251   :  { %v348_v6 = vpop.eup %347 }
 0x252   :  { %v204_v7 = vmul.f32 0.6931472, %v348_v6 }
 0x254   :  { %v210_v9 = vsel %vm209_vm6, %v207_v8, %v204_v7 }
 0x255   :  { %v211_v10 = vsel %vm199_vm7, %v196_v63, %v210_v9 }
 0x256   :  { %333 = vmatmul.msk.f32.vlgmr.msrb.gmra.mxu3 %vm96_vm1, %v211_v10 }
 0x2d9   :  { %v242_v12 = vpop.f32.mrf.mxu3 }
 0x2da   :  { %284 = vrot.lane.b32.xlu0 %v242_v12, %s429_s16  ;;  %335 = vmatmul.msk.f32.vlgmr.msrb.gmra.mxu1 %vm96_vm1, %v242_v12 }
 0x34c   :  { %v285_v13 = vpop.permute.xlu0 %284 }
 0x34d   :  { %v289_v14 = vsel %vm288_vm8, %v287_v49, %v285_v13 }
 0x34e   :  { %v291_v15 = vsel %vm290_vm9, %v289_v14, 0.0 }
 0x34f   :  { %292 = vst [vmem:[#allocation6] sm:$0xff] %v291_v15 }
 0x350   :  { %314 = dma.vmem_to_hbm [thread:$0]  %s310_s18, 128, %s312_s21, [#allocation7]  }
 0x357   :  { %v275_v17 = vpop.f32.mrf.mxu1 }
 0x358   :  { %v279_v18 = vmul.f32 %v278_v16, %v275_v17 }
 0x35a   :  { %280 = vst [vmem:[#allocation5] sm:$0xff] %v279_v18 }
 0x35b   :  { %303 = dma.vmem_to_hbm [thread:$0]  %s299_s7, 128, %s301_s1, [#allocation4]  }
 0x35c   :  { %423 = dma.done.wait [#allocation4], 128  }
 0x35d   :  { %424 = vsyncadd [#allocation4], 4294967168 }
 0x35e   :  { %425 = dma.done.wait [#allocation7], 128  }
 0x35f   :  { %426 = vsyncadd [#allocation7], 4294967168 }
 0x360   :  { %323 = vsyncpa [#allocation3], 1 }
 0x361   :  { %324 = vsyncpa [#allocation4], 1 }
 0x362   :  { %325 = vsyncpa [#allocation7], 1 }

</bundles_post_ra>
